<compile_context>
chip_gen: v5e
topology: v5e:2x2
jax: 0.10.0
libtpu: 0.0.40
codegen_flags: <defaults>
</compile_context>

<pallas_src>
import functools

import jax
import jax.numpy as jnp
import numpy as np
from jax.experimental import pallas as pl
from jax.experimental.pallas import tpu as pltpu


def _round_up(x, m):
    return (x + m - 1) // m * m


def _patch_embed_kernel(x_ref, w_ref, b_ref, o_ref):
    # x_ref: (tm, Kp) bf16, w_ref: (Kp, Ep) bf16, b_ref: (1, Ep) f32, o_ref: (tm, Ep) f32
    acc = jnp.dot(x_ref[...], w_ref[...], preferred_element_type=jnp.float32)
    o_ref[...] = (acc + b_ref[...]).astype(o_ref.dtype)


def patch_embed_matmul(patches, w_t, bias, out_dtype=jnp.float32):
    """patches: (M, Kp), w_t: (Kp, Ep), bias: (1, Ep) f32 -> (M, Ep) out_dtype.

    Kp, Ep must already be multiples of 128.  M is padded internally to a row-tile
    multiple and the padding is sliced off before returning.
    """
    M, Kp = patches.shape
    _, Ep = w_t.shape

    # Row tile: 512 at scale (256-aligned for the v6e/v7x 256x256 MXU), 256 for
    # mid sizes, otherwise the whole (16-aligned) extent so tiny problems stay
    # a single grid step.
    if M >= 512:
        tm = 512
    elif M >= 256:
        tm = 256
    else:
        tm = _round_up(M, 16)

    Mp = _round_up(M, tm)
    if Mp != M:
        patches = jnp.pad(patches, ((0, Mp - M), (0, 0)))
    grid = (Mp // tm,)

    in_itemsize = patches.dtype.itemsize
    out_itemsize = np.dtype(out_dtype).itemsize

    # VMEM budget: double-buffered patch/output tiles + (conservatively) the
    # resident weight + bias.  Clamp well under v7x's 64 MiB physical per-TC.
    vmem_bytes = (2 * tm * Kp * in_itemsize
                  + 2 * Kp * Ep * in_itemsize
                  + 2 * tm * Ep * out_itemsize
                  + 2 * Ep * 4)
    vmem_limit = int(min(max(2 * vmem_bytes, 16 * 1024 * 1024), 48 * 1024 * 1024))

    cost = pl.CostEstimate(
        flops=2 * Mp * Kp * Ep,
        transcendentals=0,
        bytes_accessed=(Mp * Kp * in_itemsize
                        + Kp * Ep * in_itemsize
                        + Mp * Ep * out_itemsize
                        + Ep * 4),
    )

    out = pl.pallas_call(
        _patch_embed_kernel,
        out_shape=jax.ShapeDtypeStruct((Mp, Ep), out_dtype),
        grid_spec=pltpu.PrefetchScalarGridSpec(
            num_scalar_prefetch=0,
            grid=grid,
            in_specs=[
                pl.BlockSpec((tm, Kp), lambda i: (i, 0)),
                pl.BlockSpec((Kp, Ep), lambda i: (0, 0)),   # VMEM-resident weight
                pl.BlockSpec((1, Ep), lambda i: (0, 0)),    # VMEM-resident bias
            ],
            out_specs=pl.BlockSpec((tm, Ep), lambda i: (i, 0)),
        ),
        compiler_params=pltpu.CompilerParams(
            dimension_semantics=("parallel",),  # shard M tiles across TCs (v7x megacore)
            # Let XLA fuse the patch-extraction transpose/cast/pad into the pallas
            # input DMA so `patches` need not be materialized in HBM.
            allow_input_fusion=[True, False, False],
            vmem_limit_bytes=vmem_limit,
        ),
        cost_estimate=cost,
    )(patches, w_t, bias)

    return out[:M]


def embedding_patch_forward(x, weight, bias, patch_size, *, compute_dtype=jnp.bfloat16):
    """Equivalent of EmbeddingPatch.forward.

    x:      (B, C, H, W)         float32
    weight: (E, C, P, P)         float32  (Conv2d weight layout)
    bias:   (E,)                 float32
    returns (B, num_patches, E)  float32
    """
    B, C, H, W = x.shape
    E = weight.shape[0]
    P = patch_size
    Hp, Wp = H // P, W // P
    M = B * Hp * Wp
    K = C * P * P
    Kp = _round_up(K, 128)   # lane-dense / full MXU tiles on the reduction dim
    Ep = _round_up(E, 128)   # lane-dense output stores (unmasked vst)

    # Patch extraction (glue).  Cast to bf16 before the transpose so any
    # materialized intermediate is half width; with allow_input_fusion XLA can
    # fold this whole chain into the kernel's input DMA.
    xc = x.astype(compute_dtype)
    xp = xc.reshape(B, C, Hp, P, Wp, P)
    xp = jnp.transpose(xp, (0, 2, 4, 1, 3, 5))          # (B, Hp, Wp, C, P, P)
    patches = xp.reshape(M, K)
    if Kp != K:
        patches = jnp.pad(patches, ((0, 0), (0, Kp - K)))

    w_t = weight.reshape(E, K).T.astype(compute_dtype)  # (K, E)
    w_t = jnp.pad(w_t, ((0, Kp - K), (0, Ep - E)))
    b2 = jnp.pad(bias.astype(jnp.float32).reshape(1, E), ((0, 0), (0, Ep - E)))

    out = patch_embed_matmul(patches, w_t, b2)          # (M, Ep) f32
    out = out[:, :E]
    return out.reshape(B, Hp * Wp, E)


if __name__ == "__main__":
    # Small shapes consistent with the module.
    B, C, H, W = 2, 4, 16, 16
    patch_size = 4
    embed_dim = 32

    key = jax.random.PRNGKey(0)
    kx, kw, kb = jax.random.split(key, 3)

    x = jax.random.normal(kx, (B, C, H, W), dtype=jnp.float32)
    # Deterministic parameter init (Conv2d-like shapes).
    fan_in = C * patch_size * patch_size
    bound = 1.0 / (fan_in ** 0.5)
    weight = jax.random.uniform(
        kw, (embed_dim, C, patch_size, patch_size),
        minval=-bound, maxval=bound, dtype=jnp.float32)
    bias = jax.random.uniform(
        kb, (embed_dim,), minval=-bound, maxval=bound, dtype=jnp.float32)

    fwd = jax.jit(functools.partial(embedding_patch_forward, patch_size=patch_size))
    out = fwd(x, weight, bias)
    out = jax.block_until_ready(out)

    # Reference check with plain JAX (strided conv == patch matmul), f32.
    ref = jax.lax.conv_general_dilated(
        x, weight, window_strides=(patch_size, patch_size), padding="VALID",
        dimension_numbers=("NCHW", "OIHW", "NCHW"))
    ref = ref + bias[None, :, None, None]
    ref = ref.reshape(B, embed_dim, -1).transpose(0, 2, 1)

    assert out.shape == (B, (H // patch_size) * (W // patch_size), embed_dim)
    # bf16 operands (f32 accumulation) -> slightly looser tolerance than pure f32.
    assert jnp.allclose(out, ref, atol=2e-2, rtol=2e-2), float(jnp.max(jnp.abs(out - ref)))
    print("KERNEL_OK")
</pallas_src>

<mosaic_0001>
module attributes {stable_mosaic.version = 11 : i64} {
  func.func @_patch_embed_kernel(%arg0: i32, %arg1: memref<32x128xbf16, #tpu.memory_space<vmem>>, %arg2: memref<128x128xbf16, #tpu.memory_space<vmem>>, %arg3: memref<1x128xf32, #tpu.memory_space<vmem>>, %arg4: memref<32x128xf32, #tpu.memory_space<vmem>>) attributes {dimension_semantics = [#tpu.dimension_semantics<parallel>], iteration_bounds = array<i64: 1>, scalar_prefetch = 0 : i64, scratch_operands = 0 : i64, tpu.core_type = #tpu.core_type<tc>, window_params = [{transform_indices = @transform_0, window_bounds = array<i64: 32, 128>}, {pipeline_mode = #tpu.pipeline_mode<synchronous>, transform_indices = @transform_1, window_bounds = array<i64: 128, 128>}, {pipeline_mode = #tpu.pipeline_mode<synchronous>, transform_indices = @transform_2, window_bounds = array<i64: 1, 128>}, {transform_indices = @transform_3, window_bounds = array<i64: 32, 128>}]} {
    %c0 = arith.constant 0 : index
    %c0_0 = arith.constant 0 : index
    %0 = vector.load %arg1[%c0, %c0_0] : memref<32x128xbf16, #tpu.memory_space<vmem>>, vector<32x128xbf16>
    %c0_1 = arith.constant 0 : index
    %c0_2 = arith.constant 0 : index
    %1 = vector.load %arg2[%c0_1, %c0_2] : memref<128x128xbf16, #tpu.memory_space<vmem>>, vector<128x128xbf16>
    %cst = arith.constant dense<0.000000e+00> : vector<32x128xf32>
    %2 = tpu.matmul %0, %1, %cst {dimension_numbers = #tpu.dot_dimension_numbers<[1], [0], [0], [1], [0, 0, 1, 1], [], []>} : vector<32x128xbf16>, vector<128x128xbf16>, vector<32x128xf32> -> vector<32x128xf32>
    %c0_3 = arith.constant 0 : index
    %c0_4 = arith.constant 0 : index
    %3 = vector.load %arg3[%c0_3, %c0_4] : memref<1x128xf32, #tpu.memory_space<vmem>>, vector<1x128xf32>
    %4 = vector.broadcast %3 : vector<1x128xf32> to vector<32x128xf32>
    %5 = arith.addf %2, %4 : vector<32x128xf32>
    %c0_5 = arith.constant 0 : index
    %c0_6 = arith.constant 0 : index
    %6 = vector.load %arg4[%c0_5, %c0_6] : memref<32x128xf32, #tpu.memory_space<vmem>>, vector<32x128xf32>
    tpu.vector_store %arg4[%c0_5, %c0_6], %5 {strides = array<i32>} : memref<32x128xf32, #tpu.memory_space<vmem>>, vector<32x128xf32>,
    return
  }
  func.func @transform_0(%arg0: i32) -> (i32, i32) {
    %c0_i32 = arith.constant 0 : i32
    %c0_i32_0 = arith.constant 0 : i32
    return %arg0, %c0_i32 : i32, i32
  }
  func.func @transform_1(%arg0: i32) -> (i32, i32) {
    %c0_i32 = arith.constant 0 : i32
    %c0_i32_0 = arith.constant 0 : i32
    %c0_i32_1 = arith.constant 0 : i32
    return %c0_i32, %c0_i32_0 : i32, i32
  }
  func.func @transform_2(%arg0: i32) -> (i32, i32) {
    %c0_i32 = arith.constant 0 : i32
    %c0_i32_0 = arith.constant 0 : i32
    %c0_i32_1 = arith.constant 0 : i32
    return %c0_i32, %c0_i32_0 : i32, i32
  }
  func.func @transform_3(%arg0: i32) -> (i32, i32) {
    %c0_i32 = arith.constant 0 : i32
    %c0_i32_0 = arith.constant 0 : i32
    return %arg0, %c0_i32 : i32, i32
  }
}

</mosaic_0001>

<bundles_post_ra>
// kernel: embedding_patch_forward.2
= control target key start
LH: loop header
LB: loop body
LE: loop exit
PB: predicated region body
PF: predicated region fallthrough
CT: control target
= control target key end

     0   :  { %s394_s0 = inlined_call_operand.vmem [shape: bf16[128,128], index: 0, kind: input, shape index: {}]   ;;  %s395_s1 = inlined_call_operand.vmem [shape: f32[1,128], index: 1, kind: input, shape index: {}]   ;;  %s396_s2 = inlined_call_operand.vmem [shape: bf16[32,64], index: 2, kind: input, shape index: {}]   ;;  %s397_s3 = inlined_call_operand.<no memory space> [shape: bf16[], index: 3, kind: input, shape index: {}]   ;;  %s398_s4 = inlined_call_operand.hbm [shape: f32[32,128], index: 4, kind: output, shape index: {}]  }
   0x1   :  { %v9_v0 = vstv %s397_s3 }
   0x2   :  { %v10_v1 = vunpack.i.l.bf16 %v9_v0 }
   0x3   :  { %v288_v2 = vld [vmem:[%s394_s0 + $0x38] sm:$0xff]  ;;  %v33_v3 = vlaneseq  ;;  %v287_v4 = vld [vmem:[%s394_s0 + $0x30] sm:$0xff]  ;;  %v30_v5 = vld [vmem:[%s396_s2] sm:$0xff]  }
   0x4   :  { %195 = vmatpush.bf16.msra.mxu0 %v288_v2  ;;  %289 = vmatpush.bf16.msra.mxu1 %v288_v2  ;;  %v31_v7 = vunpack.c.l.bf16 %v30_v5  ;;  %v53_v8 = vunpack.c.h.bf16 %v30_v5  ;;  %v237_v9 = vld [vmem:[%s396_s2 + $0x8] sm:$0xff]  }
   0x5   :  { %v34_v6 = vand.u32 127, %v33_v3  ;;  %v76_v10 = vunpack.c.l.bf16 %v237_v9  ;;  %v99_v11 = vunpack.c.h.bf16 %v237_v9 }
   0x7   :  { %vm36_vm0 = vcmp.lt.s32.totalorder %v34_v6, 64 }
   0x8   :  { %14 = vsyncpa [#allocation8], 0  ;;  %v37_v12 = vsel %vm36_vm0, %v31_v7, %v10_v1  ;;  %v59_v13 = vsel %vm36_vm0, %v53_v8, %v10_v1  ;;  %196 = vmatpush.bf16.msra.mxu0 %v287_v4  ;;  %290 = vmatpush.bf16.msra.mxu1 %v287_v4  ;;  %v286_v14 = vld [vmem:[%s394_s0 + $0x28] sm:$0xff]  ;;  %v82_v17 = vsel %vm36_vm0, %v76_v10, %v10_v1  ;;  %v285_v21 = vld [vmem:[%s394_s0 + $0x20] sm:$0xff]  ;;  %s327_s11 = smov [#allocation7]   ;;  %s224_s14 = sshll.u32 %s398_s4, 4  ;;  %s225_s14 = int_to_ptr.hbm [resolvable:$true] %s224_s14 }
   0x9   :  { %v38_v15 = vpack.c.bf16 0.0, %v37_v12  ;;  %v61_v16 = vpack.c.bf16 0.0, %v59_v13  ;;  %v105_v18 = vsel %vm36_vm0, %v99_v11, %v10_v1  ;;  %v84_v19 = vpack.c.bf16 0.0, %v82_v17  ;;  %v284_v22 = vld [vmem:[%s394_s0 + $0x18] sm:$0xff]  ;;  %v283_v23 = vld [vmem:[%s394_s0 + $0x10] sm:$0xff]  ;;  %v282_v24 = vld [vmem:[%s394_s0 + $0x8] sm:$0xff] }
   0xa   :  { %v107_v20 = vpack.c.bf16 0.0, %v105_v18  ;;  %v281_v25 = vld [vmem:[%s394_s0] sm:$0xff]  ;;  %s222_s12 = sshll.u32 %s327_s11, 4  ;;  %s329_s15 = smov 8   ;;  %s223_s12 = int_to_ptr.vmem [resolvable:$true] %s222_s12 }
   0xb   :  { %41 = vst [vmem:[#allocation9] sm:$0xf] %v38_v15  ;;  %v300_v28 = vld [vmem:[%s395_s1] ss:$0 sm:$0xff]  ;;  %s328_s1 = smov 128  }
   0xc   :  { %64 = vst [vmem:[#allocation9 + $0x4] sm:$0xf] %v61_v16  ;;  %197 = vmatpush.bf16.msra.mxu0 %v286_v14  ;;  %291 = vmatpush.bf16.msra.mxu1 %v286_v14 }
   0xd   :  { %87 = vst [vmem:[#allocation9 + $0x8] sm:$0xf] %v84_v19 }
   0xe   :  { %110 = vst [vmem:[#allocation9 + $0xc] sm:$0xf] %v107_v20 }
  0x10   :  { %198 = vmatpush.bf16.msra.mxu0 %v285_v21  ;;  %292 = vmatpush.bf16.msra.mxu1 %v285_v21 }
  0x13   :  { %v279_v26 = vld [vmem:[#allocation9] sm:$0xff] }
  0x14   :  { %199 = vmatpush.bf16.msra.mxu0 %v284_v22  ;;  %293 = vmatpush.bf16.msra.mxu1 %v284_v22 }
  0x15   :  { %v280_v27 = vld [vmem:[#allocation9 + $0x8] sm:$0xff] }
  0x18   :  { %200 = vmatpush.bf16.msra.mxu0 %v283_v23  ;;  %294 = vmatpush.bf16.msra.mxu1 %v283_v23 }
  0x1c   :  { %201 = vmatpush.bf16.msra.mxu0 %v282_v24  ;;  %295 = vmatpush.bf16.msra.mxu1 %v282_v24 }
  0x20   :  { %202 = vmatpush.bf16.msra.mxu0 %v281_v25  ;;  %296 = vmatpush.bf16.msra.mxu1 %v281_v25 }
  0x23   :  { %203 = vmatmul.bf16.vlgmr.msra.gmra.mxu0 %v279_v26  ;;  %208 = vmatmul.bf16.vlgmr.msra.gmra.mxu1 %v280_v27 }
  0xa0   :  { %v204_v29 = vpop.f32.mrf.mxu0  ;;  %v209_v30 = vpop.f32.mrf.mxu1 }
  0xa1   :  { %v205_v31 = vadd.f32 %v300_v28, %v204_v29  ;;  %v210_v32 = vadd.f32 %v300_v28, %v209_v30 }
  0xa3   :  { %214 = vst [vmem:[#allocation7] sm:$0xff] %v205_v31 }
  0xa4   :  { %216 = vst [vmem:[#allocation7 + $0x10] sm:$0xff] %v210_v32 }
  0xa8   :  { %v206_v33 = vpop.f32.mrf.mxu0  ;;  %v211_v34 = vpop.f32.mrf.mxu1 }
  0xa9   :  { %v207_v35 = vadd.f32 %v300_v28, %v206_v33  ;;  %v212_v36 = vadd.f32 %v300_v28, %v211_v34 }
  0xab   :  { %215 = vst [vmem:[#allocation7 + $0x8] sm:$0xff] %v207_v35 }
  0xac   :  { %217 = vst [vmem:[#allocation7 + $0x18] sm:$0xff] %v212_v36 }
  0xad   :  { %230 = dma.vmem_to_hbm [thread:$0]  %s223_s12, 512, %s225_s14, [#allocation8], %s328_s1, %s328_s1, %s329_s15  }
  0xae   :  { %325 = dma.done.wait [#allocation8], 512  }
  0xaf   :  { %326 = vsyncadd [#allocation8], 4294966784 }
  0xb0   :  { %235 = vsyncpa [#allocation8], 1 }

</bundles_post_ra>
